<compile_context>
chip_gen: v7x
topology: tpu7x:2x2x1
jax: 0.10.0
libtpu: 0.0.40
codegen_flags: <defaults>
</compile_context>

<pallas_src>
import jax
import jax.numpy as jnp
from jax.experimental import pallas as pl
from jax.experimental.pallas import tpu as pltpu


def _round_up(x, m):
    return (x + m - 1) // m * m


def _pad2(a, rows, cols):
    pr, pc = rows - a.shape[0], cols - a.shape[1]
    if pr == 0 and pc == 0:
        return a
    return jnp.pad(a, ((0, pr), (0, pc)))


def _lora_linear_kernel(x_ref, wt_ref, bias_ref, at_ref, bt_ref, o_ref,
                        acc_ref, down_ref):
    """Grid = (M/tm, N/tn, K/tk); k (reduction) is the innermost axis."""
    k = pl.program_id(2)

    @pl.when(k == 0)
    def _init():
        # Fold the bias into the accumulator init so the finalize branch only
        # has to add the LoRA term and cast.
        acc_ref[...] = jnp.broadcast_to(bias_ref[...], acc_ref.shape).astype(jnp.float32)
        down_ref[...] = jnp.zeros_like(down_ref)

    x_tile = x_ref[...]

    # Base matmul: (tm, tk) @ (tk, tn), weight already transposed to (K, N) in
    # HBM, so both operands are lane-dense and no in-kernel transpose is needed.
    acc_ref[...] += jnp.dot(x_tile, wt_ref[...], preferred_element_type=jnp.float32)

    # Fused LoRA down-projection: (tm, tk) @ (tk, r) accumulated across k.
    down_ref[...] += jnp.dot(x_tile, at_ref[...], preferred_element_type=jnp.float32)

    @pl.when(k == pl.num_programs(2) - 1)
    def _finalize():
        # LoRA up-projection: (tm, r) @ (r, tn); lora_B^T already carries the
        # alpha/rank scaling, tile is lane-dense along tn.
        lora = jnp.dot(down_ref[...].astype(bt_ref.dtype), bt_ref[...],
                       preferred_element_type=jnp.float32)
        o_ref[...] = (acc_ref[...] + lora).astype(o_ref.dtype)


def linear_lora_forward(x, w_base, b_base, lora_a, lora_b, *, lora_rank, lora_alpha,
                        tm=512, tn=512, tk=1024):
    """LinearLoraLayer.forward for lora_type='linear', lora_dropout=0.0.

    Args (PyTorch weight conventions):
      x:       (..., D_in)            e.g. (B, N, D_in) or (B, H, W, D_in)
      w_base:  (D_out, D_in), b_base: (D_out,)
      lora_a:  (r, D_in)              -- lora_A.weight
      lora_b:  (D_out, r)             -- lora_B.weight
    """
    scaling = float(lora_alpha) / float(lora_rank)
    orig_shape = x.shape
    d_in = x.shape[-1]
    x2 = x.reshape(-1, d_in)
    m = x2.shape[0]
    d_out = w_base.shape[0]
    r = lora_a.shape[0]

    # Dtype-aware sublane packing: 8 rows/f32, 16/bf16, 32/int8-fp8 vregs.
    itemsize = jnp.dtype(x.dtype).itemsize
    sub = {2: 16, 1: 32}.get(itemsize, 8)

    # Adaptive, MXU-friendly tiles: 256-multiples on M/N when shapes allow
    # (full 256x256 MXU tiles on v6e/v7x), lane-dense (>=128) output columns.
    tm_align = 256 if m >= 256 else sub
    tn_align = 256 if d_out >= 256 else 128
    tm = min(tm, _round_up(m, tm_align))
    tn = min(tn, _round_up(d_out, tn_align))
    tk = min(tk, _round_up(d_in, 128))

    m_p = _round_up(m, tm)
    n_p = _round_up(d_out, tn)
    k_p = _round_up(d_in, tk)

    # v7x dual-TC occupancy: if both parallel grid axes collapsed to a single
    # tile, split one of them so the second TensorCore gets work.
    if (m_p // tm) == 1 and (n_p // tn) == 1:
        if tn >= 256 and d_out > 128:
            tn = _round_up(tn // 2, 128)
            n_p = _round_up(d_out, tn)
        elif tm >= 2 * tm_align:
            tm = _round_up(tm // 2, tm_align)
            m_p = _round_up(m, tm)

    # Operand prep (no copies when already aligned; K zero-padding is exact for
    # the reduction, padded M/N rows/cols are sliced off after the call).
    # NOTE: feeding bf16 activations/weights (f32 accumulation stays in-kernel)
    # is substantially faster on the MXU when the accuracy budget allows.
    x_p = _pad2(x2, m_p, k_p)
    wt_p = _pad2(w_base.T, k_p, n_p)                 # (D_in, D_out), lane-dense tiles
    bias_p = _pad2(b_base.reshape(1, d_out), 1, n_p)
    at_p = _pad2(lora_a.T, k_p, r)                   # (D_in, r), streamed with x over K
    bt_p = _pad2((lora_b * scaling).T, r, n_p)       # (r, D_out), scaling folded in

    grid = (m_p // tm, n_p // tn, k_p // tk)

    out = pl.pallas_call(
        _lora_linear_kernel,
        out_shape=jax.ShapeDtypeStruct((m_p, n_p), x.dtype),
        grid_spec=pltpu.PrefetchScalarGridSpec(
            num_scalar_prefetch=0,
            grid=grid,
            in_specs=[
                pl.BlockSpec((tm, tk), lambda i, j, k: (i, k)),   # x
                pl.BlockSpec((tk, tn), lambda i, j, k: (k, j)),   # W_base^T (D_in, D_out)
                pl.BlockSpec((1, tn), lambda i, j, k: (0, j)),    # bias
                pl.BlockSpec((tk, r), lambda i, j, k: (k, 0)),    # lora_A^T (D_in, r)
                pl.BlockSpec((r, tn), lambda i, j, k: (0, j)),    # lora_B^T * scaling
            ],
            out_specs=pl.BlockSpec((tm, tn), lambda i, j, k: (i, j)),
            scratch_shapes=[
                pltpu.VMEM((tm, tn), jnp.float32),   # base accumulator (+bias)
                pltpu.VMEM((tm, r), jnp.float32),    # fused LoRA down-proj accumulator
            ],
        ),
        compiler_params=pltpu.CompilerParams(
            dimension_semantics=("parallel", "parallel", "arbitrary"),
            # ~11 MiB double-buffered footprint at tm=tn=512, tk=1024 f32; cap
            # kept under v7x's 64 MiB physical VMEM per TensorCore.
            vmem_limit_bytes=48 * 1024 * 1024,
        ),
    )(x_p, wt_p, bias_p, at_p, bt_p)

    out = out[:m, :d_out]
    return out.reshape(orig_shape[:-1] + (d_out,))


if __name__ == "__main__":
    # Small shapes consistent with the module: base nn.Linear(32 -> 32), rank 8.
    B, N, D_IN, D_OUT, RANK, ALPHA = 2, 8, 32, 32, 8, 1

    key = jax.random.PRNGKey(0)
    kx, kw, kb, ka, kbb = jax.random.split(key, 5)

    x = jax.random.normal(kx, (B, N, D_IN), dtype=jnp.float32)
    w_base = jax.random.normal(kw, (D_OUT, D_IN), dtype=jnp.float32) * 0.1
    b_base = jax.random.normal(kb, (D_OUT,), dtype=jnp.float32) * 0.1
    lora_a = jax.random.normal(ka, (RANK, D_IN), dtype=jnp.float32) * 0.1
    # NOTE: PyTorch init zeroes lora_B; we use small deterministic random values
    # here so the LoRA path is actually exercised numerically.
    lora_b = jax.random.normal(kbb, (D_OUT, RANK), dtype=jnp.float32) * 0.1

    out = linear_lora_forward(
        x, w_base, b_base, lora_a, lora_b, lora_rank=RANK, lora_alpha=ALPHA
    )
    out = jax.block_until_ready(out)

    # Pure-JAX reference (mirrors the PyTorch forward; dropout = Identity).
    scaling = ALPHA / RANK
    x2 = x.reshape(-1, D_IN)
    ref = x2 @ w_base.T + b_base + ((x2 @ lora_a.T) @ lora_b.T) * scaling
    ref = ref.reshape(B, N, D_OUT)

    assert out.shape == (B, N, D_OUT)
    assert jnp.allclose(out, ref, atol=1e-3, rtol=1e-3), "mismatch vs reference"
    print("KERNEL_OK")
</pallas_src>

<mosaic_0001>
module attributes {stable_mosaic.version = 11 : i64} {
  func.func @_lora_linear_kernel(%arg0: i32, %arg1: i32, %arg2: i32, %arg3: memref<8x128xf32, #tpu.memory_space<vmem>>, %arg4: memref<128x128xf32, #tpu.memory_space<vmem>>, %arg5: memref<1x128xf32, #tpu.memory_space<vmem>>, %arg6: memref<128x8xf32, #tpu.memory_space<vmem>>, %arg7: memref<8x128xf32, #tpu.memory_space<vmem>>, %arg8: memref<8x128xf32, #tpu.memory_space<vmem>>, %arg9: memref<8x128xf32, #tpu.memory_space<vmem>>, %arg10: memref<8x8xf32, #tpu.memory_space<vmem>>) attributes {dimension_semantics = [#tpu.dimension_semantics<parallel>, #tpu.dimension_semantics<parallel>, #tpu.dimension_semantics<arbitrary>], iteration_bounds = array<i64: 2, 1, 1>, scalar_prefetch = 0 : i64, scratch_operands = 2 : i64, tpu.core_type = #tpu.core_type<tc>, window_params = [{transform_indices = @transform_0, window_bounds = array<i64: 8, 128>}, {transform_indices = @transform_1, window_bounds = array<i64: 128, 128>}, {transform_indices = @transform_2, window_bounds = array<i64: 1, 128>}, {transform_indices = @transform_3, window_bounds = array<i64: 128, 8>}, {transform_indices = @transform_4, window_bounds = array<i64: 8, 128>}, {transform_indices = @transform_5, window_bounds = array<i64: 8, 128>}]} {
    %c0_i32 = arith.constant 0 : i32
    %0 = arith.cmpi eq, %arg2, %c0_i32 : i32
    %1 = arith.extui %0 : i1 to i32
    %c0_i32_0 = arith.constant 0 : i32
    %2 = arith.cmpi ne, %1, %c0_i32_0 : i32
    scf.if %2 {
      %c0_17 = arith.constant 0 : index
      %c0_18 = arith.constant 0 : index
      %17 = vector.load %arg5[%c0_17, %c0_18] : memref<1x128xf32, #tpu.memory_space<vmem>>, vector<1x128xf32>
      %18 = vector.shape_cast %17 : vector<1x128xf32> to vector<1x128xf32>
      %19 = vector.broadcast %18 : vector<1x128xf32> to vector<8x128xf32>
      %c0_19 = arith.constant 0 : index
      %c0_20 = arith.constant 0 : index
      %20 = vector.load %arg9[%c0_19, %c0_20] : memref<8x128xf32, #tpu.memory_space<vmem>>, vector<8x128xf32>
      tpu.vector_store %arg9[%c0_19, %c0_20], %19 {strides = array<i32>} : memref<8x128xf32, #tpu.memory_space<vmem>>, vector<8x128xf32>,
      %cst_21 = arith.constant 0.000000e+00 : f32
      %21 = vector.broadcast %cst_21 : f32 to vector<8x8xf32>
      %c0_22 = arith.constant 0 : index
      %c0_23 = arith.constant 0 : index
      %22 = vector.load %arg10[%c0_22, %c0_23] : memref<8x8xf32, #tpu.memory_space<vmem>>, vector<8x8xf32>
      tpu.vector_store %arg10[%c0_22, %c0_23], %21 {strides = array<i32>} : memref<8x8xf32, #tpu.memory_space<vmem>>, vector<8x8xf32>,
    } else {
    }
    %c0 = arith.constant 0 : index
    %c0_1 = arith.constant 0 : index
    %3 = vector.load %arg3[%c0, %c0_1] : memref<8x128xf32, #tpu.memory_space<vmem>>, vector<8x128xf32>
    %c0_2 = arith.constant 0 : index
    %c0_3 = arith.constant 0 : index
    %4 = vector.load %arg9[%c0_2, %c0_3] : memref<8x128xf32, #tpu.memory_space<vmem>>, vector<8x128xf32>
    %c0_4 = arith.constant 0 : index
    %c0_5 = arith.constant 0 : index
    %5 = vector.load %arg4[%c0_4, %c0_5] : memref<128x128xf32, #tpu.memory_space<vmem>>, vector<128x128xf32>
    %cst = arith.constant dense<0.000000e+00> : vector<8x128xf32>
    %6 = tpu.matmul %3, %5, %cst {dimension_numbers = #tpu.dot_dimension_numbers<[1], [0], [0], [1], [0, 0, 1, 1], [], []>} : vector<8x128xf32>, vector<128x128xf32>, vector<8x128xf32> -> vector<8x128xf32>
    %7 = arith.addf %4, %6 : vector<8x128xf32>
    %c0_6 = arith.constant 0 : index
    %c0_7 = arith.constant 0 : index
    %8 = vector.load %arg9[%c0_6, %c0_7] : memref<8x128xf32, #tpu.memory_space<vmem>>, vector<8x128xf32>
    tpu.vector_store %arg9[%c0_6, %c0_7], %7 {strides = array<i32>} : memref<8x128xf32, #tpu.memory_space<vmem>>, vector<8x128xf32>,
    %c0_8 = arith.constant 0 : index
    %c0_9 = arith.constant 0 : index
    %9 = vector.load %arg10[%c0_8, %c0_9] : memref<8x8xf32, #tpu.memory_space<vmem>>, vector<8x8xf32>
    %c0_10 = arith.constant 0 : index
    %c0_11 = arith.constant 0 : index
    %10 = vector.load %arg6[%c0_10, %c0_11] : memref<128x8xf32, #tpu.memory_space<vmem>>, vector<128x8xf32>
    %cst_12 = arith.constant dense<0.000000e+00> : vector<8x8xf32>
    %11 = tpu.matmul %3, %10, %cst_12 {dimension_numbers = #tpu.dot_dimension_numbers<[1], [0], [0], [1], [0, 0, 1, 1], [], []>} : vector<8x128xf32>, vector<128x8xf32>, vector<8x8xf32> -> vector<8x8xf32>
    %12 = arith.addf %9, %11 : vector<8x8xf32>
    %c0_13 = arith.constant 0 : index
    %c0_14 = arith.constant 0 : index
    %13 = vector.load %arg10[%c0_13, %c0_14] : memref<8x8xf32, #tpu.memory_space<vmem>>, vector<8x8xf32>
    tpu.vector_store %arg10[%c0_13, %c0_14], %12 {strides = array<i32>} : memref<8x8xf32, #tpu.memory_space<vmem>>, vector<8x8xf32>,
    %c0_i32_15 = arith.constant 0 : i32
    %14 = arith.cmpi eq, %arg2, %c0_i32_15 : i32
    %15 = arith.extui %14 : i1 to i32
    %c0_i32_16 = arith.constant 0 : i32
    %16 = arith.cmpi ne, %15, %c0_i32_16 : i32
    scf.if %16 {
      %c0_17 = arith.constant 0 : index
      %c0_18 = arith.constant 0 : index
      %17 = vector.load %arg10[%c0_17, %c0_18] : memref<8x8xf32, #tpu.memory_space<vmem>>, vector<8x8xf32>
      %c0_19 = arith.constant 0 : index
      %c0_20 = arith.constant 0 : index
      %18 = vector.load %arg7[%c0_19, %c0_20] : memref<8x128xf32, #tpu.memory_space<vmem>>, vector<8x128xf32>
      %cst_21 = arith.constant dense<0.000000e+00> : vector<8x128xf32>
      %19 = tpu.matmul %17, %18, %cst_21 {dimension_numbers = #tpu.dot_dimension_numbers<[1], [0], [0], [1], [0, 0, 1, 1], [], []>} : vector<8x8xf32>, vector<8x128xf32>, vector<8x128xf32> -> vector<8x128xf32>
      %c0_22 = arith.constant 0 : index
      %c0_23 = arith.constant 0 : index
      %20 = vector.load %arg9[%c0_22, %c0_23] : memref<8x128xf32, #tpu.memory_space<vmem>>, vector<8x128xf32>
      %21 = arith.addf %20, %19 : vector<8x128xf32>
      %c0_24 = arith.constant 0 : index
      %c0_25 = arith.constant 0 : index
      %22 = vector.load %arg8[%c0_24, %c0_25] : memref<8x128xf32, #tpu.memory_space<vmem>>, vector<8x128xf32>
      tpu.vector_store %arg8[%c0_24, %c0_25], %21 {strides = array<i32>} : memref<8x128xf32, #tpu.memory_space<vmem>>, vector<8x128xf32>,
    } else {
    }
    return
  }
  func.func @transform_0(%arg0: i32, %arg1: i32, %arg2: i32) -> (i32, i32) {
    %c0_i32 = arith.constant 0 : i32
    return %arg0, %arg2 : i32, i32
  }
  func.func @transform_1(%arg0: i32, %arg1: i32, %arg2: i32) -> (i32, i32) {
    %c0_i32 = arith.constant 0 : i32
    return %arg2, %arg1 : i32, i32
  }
  func.func @transform_2(%arg0: i32, %arg1: i32, %arg2: i32) -> (i32, i32) {
    %c0_i32 = arith.constant 0 : i32
    %c0_i32_0 = arith.constant 0 : i32
    return %c0_i32, %arg1 : i32, i32
  }
  func.func @transform_3(%arg0: i32, %arg1: i32, %arg2: i32) -> (i32, i32) {
    %c0_i32 = arith.constant 0 : i32
    %c0_i32_0 = arith.constant 0 : i32
    return %arg2, %c0_i32 : i32, i32
  }
  func.func @transform_4(%arg0: i32, %arg1: i32, %arg2: i32) -> (i32, i32) {
    %c0_i32 = arith.constant 0 : i32
    %c0_i32_0 = arith.constant 0 : i32
    return %c0_i32, %arg1 : i32, i32
  }
  func.func @transform_5(%arg0: i32, %arg1: i32, %arg2: i32) -> (i32, i32) {
    %c0_i32 = arith.constant 0 : i32
    return %arg0, %arg1 : i32, i32
  }
}

</mosaic_0001>

<bundles_post_ra>
// kernel: tpu_custom_call.1
= control target key start
LH: loop header
LB: loop body
LE: loop exit
PB: predicated region body
PF: predicated region fallthrough
CT: control target
= control target key end

     0   :  { %10 = vsyncpa [#allocation5], 0  ;;  %s1486_s0 = inlined_call_operand.hbm [shape: f32[16,128], index: 0, kind: input, shape index: {}]   ;;  %s1487_s1 = inlined_call_operand.vmem [shape: f32[128,128], index: 1, kind: input, shape index: {}]   ;;  %s1488_s2 = inlined_call_operand.vmem [shape: f32[1,128], index: 2, kind: input, shape index: {}]   ;;  %s1489_s3 = inlined_call_operand.vmem [shape: f32[128,8], index: 3, kind: input, shape index: {}]   ;;  %s1490_s4 = inlined_call_operand.vmem [shape: f32[8,128], index: 4, kind: input, shape index: {}]   ;;  %s1491_s5 = inlined_call_operand.hbm [shape: f32[16,128], index: 5, kind: output, shape index: {}]  }
   0x1   :  { %12 = vsyncpa [#allocation5 + $0x1], 0 }
   0x2   :  { %13 = vsyncpa [#allocation6], 0 }
   0x3   :  { %15 = vsyncpa [#allocation6 + $0x1], 0  ;;  %s1178_s18 = smov 0   ;;  %s1180_s19 = smov 0  }
   0x4   :  { %s1182_s20 = smov 0   ;;  %s1184_s21 = smov 0  }
   0x5   :  { %s1186_s22 = smov 0   ;;  %s1188_s23 = smov 0  }
   0x6 LB: > { %s783_s24 = sadd.s32 4294967295, %s1141_s23   ;;  %s784_s25 = sadd.s32 4294967294, %s1141_s23   ;;  %s1141_s23 = sphi %s1188_s23, %s21_s23   ;;  %s1137_s22 = sphi %s1186_s22, %s1507_s22   ;;  %s1133_s21 = sphi %s1184_s21, %s1506_s21   ;;  %s1129_s20 = sphi %s1182_s20, %s1505_s20   ;;  %s1125_s19 = sphi %s1180_s19, %s1504_s19   ;;  %s1121_s18 = sphi %s1178_s18, %s1503_s18  }
   0x7   : > { %s40_s26 = sadd.s32 1, %s1137_s22  ;;  %s49_s27 = sadd.s32 1, %s1129_s20 }
   0x8   : > { %p42_p0 = scmp.ge.s32.totalorder %s40_s26, 2  ;;  %p56_p1 = scmp.ne.s32.totalorder %s1129_s20, %s1125_s19 }
   0x9   : > { %p57_p2 = scmp.eq.s32.totalorder %s1141_s23, 0  ;;  %p62_p3 = scmp.ne.s32.totalorder %s1125_s19, %s1121_s18 }
   0xa   : > { %s1509_s26 = smov (%p42_p0, %s40_s26), 0  ;;  %p63_p5 = scmp.eq.s32.totalorder %s783_s24, 0 }
   0xb   : > { %p1219_p4 = por %p57_p2, %p56_p1  ;;  %s44_s29 = ssub.s32 %s1137_s22, %s1509_s26 }
   0xc   : > { %p194_p6 = scmp.eq.s32.totalorder %s783_s24, 1  ;;  %p47_p7 = scmp.eq.s32.totalorder %s44_s29, 0 }
   0xd   : > { %p1225_p8 = por %p63_p5, %p62_p3  ;;  %p200_p10 = scmp.eq.s32.totalorder %s784_s25, 1 }
   0xe   : > { %p1229_p9 = por %p194_p6, %p56_p1  ;;  %p976_p13 = scmp.lt.s32.totalorder %s1141_s23, 2 }
   0xf   : > { %s1234_s7 = scalar_select %p47_p7, %s1129_s20, %s49_s27  }
  0x10   : > { %s1495_s6 = scalar_select %p1229_p9, 1, 0 }
  0x11   : > { %p1236_p11 = por %p200_p10, %p62_p3  ;;  %s254_s9 = sand.u32 1, %s1129_s20  }
  0x12   : > { %s791_s10 = sshll.u32 %s254_s9, 3  ;;  %s792_s11 = sshll.u32 %s1137_s22, 7 }
  0x13   : > { %s1496_s8 = scalar_select %p1236_p11, 1, 0 }
  0x14   : > { %s1247_s14 = scalar_lea.hbm %s1486_s0, %s792_s11  ;;  %s258_s15 = scalar_lea.vmem [#allocation4], %s791_s10 }
  0x15   : > { %s266_s16 = sshll.u32 %s258_s15, 4  ;;  %p1253_p0 = pnand %p976_p13, %p1219_p4  ;;  %s1249_s16 = int_to_ptr.vmem [resolvable:$true] %s266_s16 }
  0x16   : > { %s255_s24 = scalar_lea.sflag [#allocation5], %s254_s9  ;;  %s1029_s25 = scalar_lea.hbm %s1247_s14, 128 }
  0x17   : > { %p1030_p3 = scmp.ne.s32.totalorder %s1247_s14, %s1029_s25  ;;  %p1031_p5 = pneg %p1253_p0 }
  0x18   : > { %s1034_s28 = scalar_lea.hbm %s1486_s0, 256  ;;  %p1035_p4 = scmp.lt.u32.totalorder %s1247_s14, %s1486_s0 }
  0x19   : > { %p1032_p6 = pnand %p1031_p5, %p1030_p3  ;;  %p1036_p10 = scmp.lt.u32.totalorder %s1034_s28, %s1029_s25 }
  0x1a   : > { %p1038_p12 = scmp.lt.u32.totalorder %s1029_s25, %s1247_s14 }
  0x1b   : > { %p1033_p7 = pneg %p1032_p6  ;;  %p1037_p13 = por %p1036_p10, %p1035_p4 }
  0x1d   : > { %p1039_p1 = por %p1038_p12, %p1037_p13 }
  0x1f   : > { %p1040_p2 = pnand %p1039_p1, %p1033_p7 }
  0x21   : > { %1043 = shalt.err (!%p1040_p2)
}
  0x22   : > { %s1044_s9 = scalar_lea.vmem %s1249_s16, 128  ;;  %s1143_s12 = smov [#allocation4]  }
  0x23   : > { %p1045_p3 = scmp.ne.s32.totalorder %s1249_s16, %s1044_s9  ;;  %s1049_s13 = sshll.u32 %s1143_s12, 4  ;;  %s1050_s13 = int_to_ptr.vmem [resolvable:$false] %s1049_s13 }
  0x24   : > { %s1051_s15 = scalar_lea.vmem %s1050_s13, 256  ;;  %p1052_p9 = scmp.lt.s32.totalorder %s1249_s16, %s1050_s13 }
  0x25   : > { %p1047_p6 = pnand %p1045_p3, %p1031_p5  ;;  %p1053_p4 = scmp.lt.s32.totalorder %s1051_s15, %s1044_s9 }
  0x27   : > { %p1048_p11 = pneg %p1047_p6  ;;  %p1054_p10 = por %p1053_p4, %p1052_p9 }
  0x29   : > { %p1055_p12 = pnand %p1054_p10, %p1048_p11 }
  0x2b   : > { %1058 = shalt.err (!%p1055_p12)
}
  0x2c   : > { %971 = dma.hbm_to_vmem [thread:$0]  (!%p1253_p0), %s1247_s14, 128, %s1249_s16, %s255_s24  }
  0x2d   : > { %p1498_p1 = scmp.lt.s32.totalorder %s1141_s23, 3  ;;  %p1499_p2 = scmp.ge.s32.totalorder %s1141_s23, 1 }
  0x2f   : > { %p272_p5 = pnand %p1499_p2, %p1498_p1 }
  0x30   : > { %s1289_s25 = sand.u32 (!%p272_p5), 1, %s1125_s19  }
  0x31   : > { %275 = sbr.rel (%p272_p5) target bundleno = 542 (0x21e), region = 40  ;;  %s794_s27 = sshll.u32 (!%p272_p5), %s1289_s25, 3 }
  0x32   : > { %s278_s29 = scalar_lea.sflag (!%p272_p5), [#allocation5], %s1289_s25  ;;  %s1295_s17 = scalar_lea.vmem (!%p272_p5), [#allocation4], %s794_s27 }
  0x38   : > { %1112 = dma.done.wait (%p1225_p8), %s278_s29, 128  }
  0x39   : > { %1114 = vsyncadd (%p1225_p8), %s278_s29, 4294967168  ;;  %vm362_vm0 = vcmask 64512   ;;  %v1144_v0 = vmov 0.0|0.0   ;;  %vm1145_vm1 = vmmov 0   ;;  %v1146_v1 = vmov 0.0   ;;  %v455_v2 = vld [vmem:[%s1489_s3] sm:$0xff] }
  0x3a   : > { %937 = vmatprep.subr.bf16.mxu1 %v1144_v0  ;;  %905 = vmatprep.mubr.msk.f32.mxu1 %vm1145_vm1, %v1146_v1  ;;  %363 = vst.msk [vmem:[#allocation3] sm:$0xff] %vm362_vm0, %v1146_v1  ;;  %v456_v3 = vld [vmem:[%s1489_s3 + $0x8] sm:$0xff]  ;;  %v457_v4 = vld [vmem:[%s1489_s3 + $0x10] sm:$0xff]  ;;  %v458_v6 = vld [vmem:[%s1489_s3 + $0x18] sm:$0xff]  ;;  %s799_s9 = sshll.u32 %s1133_s21, 7  ;;  %s327_s12 = scalar_lea.vmem [#allocation7], %s794_s27 }
  0x3b   : > { %913 = vmatprep.subr.bf16.mxu0 %v1144_v0  ;;  %870 = vmatprep.mubr.msk.f32.mxu0 %vm1145_vm1, %v1146_v1  ;;  %v938_v5 = vpack.c.bf16 %v456_v3, %v455_v2  ;;  %v941_v7 = vpack.c.bf16 %v458_v6, %v457_v4  ;;  %v459_v8 = vld [vmem:[%s1489_s3 + $0x20] sm:$0xff]  ;;  %v460_v9 = vld [vmem:[%s1489_s3 + $0x28] sm:$0xff]  ;;  %v368_v12 = vld [vmem:[%s1487_s1 + $0x10] sm:$0xff]  ;;  %s640_s13 = sshll.u32 %s327_s12, 4  ;;  %s1437_s14 = scalar_lea.hbm %s1491_s5, %s799_s9  ;;  %s1439_s13 = int_to_ptr.vmem [resolvable:$true] %s640_s13 }
  0x3c   : > { %v366_v10 = vld [vmem:[%s1487_s1] sm:$0xff]  ;;  %v367_v11 = vld [vmem:[%s1487_s1 + $0x8] sm:$0xff]  ;;  %v369_v13 = vld [vmem:[%s1487_s1 + $0x18] sm:$0xff]  ;;  %v944_v14 = vpack.c.bf16 %v460_v9, %v459_v8  ;;  %s626_s30 = scalar_lea.sflag [#allocation6], %s1289_s25  ;;  %s1059_s16 = scalar_lea.vmem %s1439_s13, 128 }
  0x3d   : > { %939 = vmatpush3.bf16.msra.mxu1 %v938_v5  ;;  %v914_v15 = vpack.c.bf16 %v367_v11, %v366_v10  ;;  %v461_v16 = vld [vmem:[%s1489_s3 + $0x30] sm:$0xff]  ;;  %v462_v17 = vld [vmem:[%s1489_s3 + $0x38] sm:$0xff]  ;;  %v917_v18 = vpack.c.bf16 %v369_v13, %v368_v12  ;;  %v370_v19 = vld [vmem:[%s1487_s1 + $0x20] sm:$0xff]  ;;  %p1060_p8 = scmp.ne.s32.totalorder %s1439_s13, %s1059_s16  ;;  %p1500_p9 = scmp.ne.s32.totalorder %s1495_s6, 0 }
  0x3e   : > { %940 = vmatprep.subr.bf16.mxu1 %v1144_v0  ;;  %v371_v20 = vld [vmem:[%s1487_s1 + $0x28] sm:$0xff]  ;;  %v947_v21 = vpack.c.bf16 %v462_v17, %v461_v16  ;;  %v463_v22 = vld [vmem:[%s1489_s3 + $0x40] sm:$0xff]  ;;  %v372_v25 = vld [vmem:[%s1487_s1 + $0x30] sm:$0xff]  ;;  %s1147_s21 = smov [#allocation7]  }
  0x3f   : > { %915 = vmatpush3.bf16.msra.mxu0 %v914_v15  ;;  %v464_v23 = vld [vmem:[%s1489_s3 + $0x48] sm:$0xff]  ;;  %v920_v24 = vpack.c.bf16 %v371_v20, %v370_v19  ;;  %v373_v26 = vld [vmem:[%s1487_s1 + $0x38] sm:$0xff]  ;;  %v465_v28 = vld [vmem:[%s1489_s3 + $0x50] sm:$0xff]  ;;  %p1061_p11 = pnand %p1060_p8, %p1500_p9  ;;  %s1063_s27 = sshll.u32 %s1147_s21, 4  ;;  %s1064_s27 = int_to_ptr.vmem [resolvable:$false] %s1063_s27 }
  0x40   : > { %916 = vmatprep.subr.bf16.mxu0 %v1144_v0  ;;  %v950_v27 = vpack.c.bf16 %v464_v23, %v463_v22  ;;  %v466_v29 = vld [vmem:[%s1489_s3 + $0x58] sm:$0xff]  ;;  %v923_v30 = vpack.c.bf16 %v373_v26, %v372_v25  ;;  %v374_v31 = vld [vmem:[%s1487_s1 + $0x40] sm:$0xff]  ;;  %v375_v32 = vld [vmem:[%s1487_s1 + $0x48] sm:$0xff]  ;;  %s1065_s24 = scalar_lea.vmem %s1064_s27, 256  ;;  %p1066_p7 = scmp.lt.s32.totalorder %s1439_s13, %s1064_s27 }
  0x41   : > { %942 = vmatpush3.bf16.msra.mxu1 %v941_v7  ;;  %v953_v33 = vpack.c.bf16 %v466_v29, %v465_v28  ;;  %v467_v34 = vld [vmem:[%s1489_s3 + $0x60] sm:$0xff]  ;;  %v468_v35 = vld [vmem:[%s1489_s3 + $0x68] sm:$0xff]  ;;  %v926_v36 = vpack.c.bf16 %v375_v32, %v374_v31  ;;  %v376_v37 = vld [vmem:[%s1487_s1 + $0x50] sm:$0xff]  ;;  %p1062_p0 = pneg %p1061_p11  ;;  %p1067_p13 = scmp.lt.s32.totalorder %s1065_s24, %s1059_s16 }
  0x42   : > { %943 = vmatprep.subr.bf16.mxu1 %v1144_v0  ;;  %v377_v38 = vld [vmem:[%s1487_s1 + $0x58] sm:$0xff]  ;;  %v956_v39 = vpack.c.bf16 %v468_v35, %v467_v34  ;;  %v469_v40 = vld [vmem:[%s1489_s3 + $0x70] sm:$0xff]  ;;  %v378_v43 = vld [vmem:[%s1487_s1 + $0x60] sm:$0xff] }
  0x43   : > { %918 = vmatpush3.bf16.msra.mxu0 %v917_v18  ;;  %v470_v41 = vld [vmem:[%s1489_s3 + $0x78] sm:$0xff]  ;;  %v929_v42 = vpack.c.bf16 %v377_v38, %v376_v37  ;;  %v379_v44 = vld [vmem:[%s1487_s1 + $0x68] sm:$0xff]  ;;  %v380_v47 = vld [vmem:[%s1487_s1 + $0x70] sm:$0xff]  ;;  %p1068_p3 = por %p1067_p13, %p1066_p7 }
  0x44   : > { %919 = vmatprep.subr.bf16.mxu0 %v1144_v0  ;;  %v959_v45 = vpack.c.bf16 %v470_v41, %v469_v40  ;;  %v932_v46 = vpack.c.bf16 %v379_v44, %v378_v43  ;;  %v381_v48 = vld [vmem:[%s1487_s1 + $0x78] sm:$0xff]  ;;  %v364_v49 = vld [vmem:[%s1295_s17] sm:$0xff]  ;;  %v548_v51 = vld [vmem:[%s1490_s4] sm:$0xff] }
  0x45   : > { %945 = vmatpush3.bf16.msra.mxu1 %v944_v14  ;;  %v935_v50 = vpack.c.bf16 %v381_v48, %v380_v47  ;;  %v454_v52 = vld [vmem:[#allocation3] sm:$0xff]  ;;  %p1069_p6 = pnand %p1068_p3, %p1062_p0 }
  0x46   : > { %946 = vmatprep.subr.bf16.mxu1 %v1144_v0  ;;  %v796_v57 = vld [vmem:[%s1488_s2] ss:$0 sm:$0xff] }
  0x47   : > { %921 = vmatpush3.bf16.msra.mxu0 %v920_v24 }
  0x48   : > { %922 = vmatprep.subr.bf16.mxu0 %v1144_v0 }
  0x49   : > { %948 = vmatpush3.bf16.msra.mxu1 %v947_v21 }
  0x4a   : > { %949 = vmatprep.subr.bf16.mxu1 %v1144_v0 }
  0x4b   : > { %924 = vmatpush3.bf16.msra.mxu0 %v923_v30 }
  0x4c   : > { %925 = vmatprep.subr.bf16.mxu0 %v1144_v0 }
  0x4d   : > { %951 = vmatpush3.bf16.msra.mxu1 %v950_v27 }
  0x4e   : > { %952 = vmatprep.subr.bf16.mxu1 %v1144_v0 }
  0x4f   : > { %927 = vmatpush3.bf16.msra.mxu0 %v926_v36 }
  0x50   : > { %928 = vmatprep.subr.bf16.mxu0 %v1144_v0 }
  0x51   : > { %954 = vmatpush3.bf16.msra.mxu1 %v953_v33 }
  0x52   : > { %955 = vmatprep.subr.bf16.mxu1 %v1144_v0 }
  0x53   : > { %930 = vmatpush3.bf16.msra.mxu0 %v929_v42 }
  0x54   : > { %931 = vmatprep.subr.bf16.mxu0 %v1144_v0 }
  0x55   : > { %957 = vmatpush3.bf16.msra.mxu1 %v956_v39 }
  0x56   : > { %958 = vmatprep.subr.bf16.mxu1 %v1144_v0 }
  0x57   : > { %933 = vmatpush3.bf16.msra.mxu0 %v932_v46 }
  0x58   : > { %934 = vmatprep.subr.bf16.mxu0 %v1144_v0 }
  0x59   : > { %960 = vmatpush3.bf16.msra.mxu1 %v959_v45 }
  0x5b   : > { %936 = vmatpush3.bf16.msra.mxu0 %v935_v50 }
  0x5c   : > { %906 = vmatmul.mubr.f32.vlgmr.msra.gmra.mrb[0].mxu1 %v364_v49  ;;  %908 = vmatprep.subr.mxu0 %v1146_v1 }
  0x5e   : > { %871 = vmatmul.mubr.f32.vlgmr.msra.gmra.mrb[0].mxu0 %v364_v49 }
  0x5f   : > { %910 = vmatprep.mubr.msk.f32.mxu0 %vm1145_vm1, %v1146_v1  ;;  %909 = vmatpush3.msra.mxu0 %v548_v51 }
 0x12f   : > { %v537_v53 = vpop.f32.mrb[0].mxu1 }
 0x130   : > { %v541_v54 = vadd.f32 %v537_v53, %v454_v52  ;;  %v907_v55 = vpop.f32.mrb[1].mxu1 }
 0x132   : > { %543 = vst.msk [vmem:[#allocation3] sm:$0xff] %vm362_vm0, %v541_v54 }
 0x139   : > { %v547_v56 = vld [vmem:[#allocation3] sm:$0xff] }
 0x13a   : > { %911 = vmatmul.mubr.msk.f32.vlgmr.msra.gmra.mrb[0].mxu0 %vm362_vm0, %v547_v56 }
 0x20d   : > { %v618_v58 = vpop.f32.mrb[0].mxu0 }
 0x20e   : > { %v961_v59 = vadd.f32 %v796_v57, %v618_v58  ;;  %v912_v60 = vpop.f32.mrb[1].mxu0 }
 0x210   : > { %624 = vst [vmem:[%s327_s12] sm:$0xff] %v961_v59 }
 0x211   : > { %1072 = shalt.err (!%p1069_p6)
}
 0x212   : > { %s1073_s25 = scalar_lea.hbm %s1437_s14, 128  ;;  %s1077_s17 = scalar_lea.hbm %s1491_s5, 256 }
 0x213   : > { %p1074_p4 = scmp.ne.s32.totalorder %s1437_s14, %s1073_s25  ;;  %p1078_p1 = scmp.lt.u32.totalorder %s1437_s14, %s1491_s5 }
 0x214   : > { %p1079_p2 = scmp.lt.u32.totalorder %s1077_s17, %s1073_s25  ;;  %p1081_p8 = scmp.lt.u32.totalorder %s1073_s25, %s1437_s14 }
 0x215   : > { %p1075_p10 = pnand %p1074_p4, %p1500_p9 }
 0x216   : > { %p1080_p5 = por %p1079_p2, %p1078_p1 }
 0x217   : > { %p1076_p12 = pneg %p1075_p10 }
 0x218   : > { %p1082_p11 = por %p1081_p8, %p1080_p5 }
 0x21a   : > { %p1083_p0 = pnand %p1082_p11, %p1076_p12 }
 0x21c   : > { %1086 = shalt.err (!%p1083_p0)
}
 0x21d   : > { %966 = dma.vmem_to_hbm [thread:$0]  (%p1500_p9), %s1439_s13, 128, %s1437_s14, %s626_s30  }
 0x21e PF: > { %s652_s12 = sand.u32 1, %s1121_s18   ;;  %p1501_p7 = scmp.ne.s32.totalorder %s1496_s8, 0 }
 0x21f   : > { %p1502_p13 = scmp.ge.s32.totalorder %s1141_s23, 2  ;;  %s653_s15 = scalar_lea.sflag [#allocation6], %s652_s12 }
 0x221   : > { %p973_p3 = pnand %p1502_p13, %p1501_p7 }
 0x223   : > { %1116 = dma.done.wait (!%p973_p3), %s653_s15, 128  }
 0x224   : > { %1118 = vsyncadd (!%p973_p3), %s653_s15, 4294967168  ;;  %s21_s23 = sadd.s32 1, %s1141_s23   ;;  %s1503_s18 = smov %s1125_s19 }
 0x225   : > { %p18_p6 = scmp.ge.s32.totalorder %s21_s23, 4   ;;  %s1504_s19 = smov %s1129_s20 }
 0x226   : > { %s1505_s20 = smov %s1234_s7  ;;  %s1506_s21 = smov %s1137_s22 }
 0x227   : > { %s1507_s22 = smov %s1509_s26  ;;  %20 = sbr.rel (!%p18_p6) target bundleno = 6 (0x6), region = 105 }
 0x22e   :  { %658 = vsyncpa [#allocation5], 1 }
 0x22f   :  { %660 = vsyncpa [#allocation5 + $0x1], 1 }
 0x230   :  { %661 = vsyncpa [#allocation6], 1 }
 0x231   :  { %663 = vsyncpa [#allocation6 + $0x1], 1 }

</bundles_post_ra>
